<compile_context>
chip_gen: v7x
topology: tpu7x:2x2x1
jax: 0.10.0
libtpu: 0.0.40
codegen_flags: <defaults>
</compile_context>

<pallas_src>
import math
from functools import partial

import jax
import jax.numpy as jnp
from jax.experimental import pallas as pl
from jax.experimental.pallas import tpu as pltpu


def _round_up(n, m):
    return ((n + m - 1) // m) * m


def _make_kernel(compute_dtype):
    def kernel(x_ref, w1_ref, b1_ref, w2_ref, b2_ref,
               wh1_ref, bh1_ref, wh2_ref, bh2_ref, out_ref):
        # Feature-major: x_ref is (obs, TB) already in compute_dtype (cast in wrapper).
        # Every dot accumulates in f32; bias add / ReLU stay f32 (v5e-safe).  The
        # .astype(compute_dtype) on intermediates is a no-op on the f32 path.
        x = x_ref[...]
        h = jnp.dot(w1_ref[...], x, preferred_element_type=jnp.float32) + b1_ref[...]
        h = jnp.maximum(h, 0.0)                                     # (128, TB)
        h = jnp.dot(w2_ref[...], h.astype(compute_dtype),
                    preferred_element_type=jnp.float32) + b2_ref[...]
        h = jnp.maximum(h, 0.0)                                     # (64, TB) = fc_out^T
        g = jnp.dot(wh1_ref[...], h.astype(compute_dtype),
                    preferred_element_type=jnp.float32) + bh1_ref[...]
        g = jnp.maximum(g, 0.0)                                     # (64, TB) = [policy_hid; value_hid]
        out_ref[...] = jnp.dot(wh2_ref[...], g.astype(compute_dtype),
                               preferred_element_type=jnp.float32) + bh2_ref[...]
    return kernel


def fuse_params(params, n_actions, compute_dtype=jnp.float32):
    """Transpose weights to (out, in) for the feature-major kernel, fuse policy/value
    heads (block-diagonal output layer padded to 8 sublanes), and pre-cast MXU operands
    to `compute_dtype` ONCE (biases stay f32)."""
    wd = compute_dtype
    hp = params["wp1"].shape[1]                                     # policy hidden (32)
    hv = params["wv1"].shape[1]                                     # value hidden (32)
    out_rows = _round_up(n_actions + 1, 8)                          # padded output sublanes

    w1 = params["w1"].T.astype(wd)                                  # (128, obs)
    b1 = params["b1"].reshape(-1, 1)                                # (128, 1) f32
    w2 = params["w2"].T.astype(wd)                                  # (64, 128)
    b2 = params["b2"].reshape(-1, 1)                                # (64, 1)

    # Fused hidden layer of both heads: rows [0:hp) policy, [hp:hp+hv) value.
    wh1 = jnp.concatenate([params["wp1"].T, params["wv1"].T], axis=0).astype(wd)  # (64, 64)
    bh1 = jnp.concatenate([params["bp1"], params["bv1"]], axis=1).reshape(-1, 1)  # (64, 1)

    # Fused block-diagonal output layer (8, 64): policy rows read cols [0:hp),
    # the value row reads cols [hp:hp+hv); remaining pad rows are zero.
    wh2 = jnp.zeros((out_rows, hp + hv), jnp.float32)
    wh2 = wh2.at[:n_actions, :hp].set(params["wp2"].T)
    wh2 = wh2.at[n_actions:n_actions + 1, hp:hp + hv].set(params["wv2"].T)
    bh2 = jnp.zeros((out_rows, 1), jnp.float32)
    bh2 = bh2.at[:n_actions, 0].set(params["bp2"][0])
    bh2 = bh2.at[n_actions, 0].set(params["bv2"][0, 0])

    return dict(w1=w1, b1=b1, w2=w2, b2=b2,
                wh1=wh1, bh1=bh1, wh2=wh2.astype(wd), bh2=bh2)


@partial(jax.jit, static_argnames=("n_actions", "tile_b"))
def lunar_a2c_forward(x, fused, *, n_actions, tile_b=8192):
    """x: (B, obs_dim). fused: output of fuse_params. Returns (policy (B,n_actions), value (B,1))."""
    compute_dtype = fused["w1"].dtype
    B, obs_dim = x.shape
    out_rows = fused["wh2"].shape[0]                                # 8 for LunarLander
    h1, h2, hh = fused["w1"].shape[0], fused["w2"].shape[0], fused["wh1"].shape[0]

    # Batch-on-lanes layout: transpose x to (obs, B).  Inside jit this fuses with the
    # dtype cast / padding; batch tile must be a multiple of 128 lanes.
    x_t = x.astype(compute_dtype).T

    b128 = _round_up(B, 128)
    tb = min(_round_up(tile_b, 128), b128)
    if b128 >= 2 * 128 and tb >= b128:
        # v7x megacore: keep at least 2 "parallel" grid steps when the batch allows it.
        tb = _round_up(b128 // 2, 128)
    b_pad = _round_up(B, tb)
    if b_pad != B:
        x_t = jnp.pad(x_t, ((0, 0), (0, b_pad - B)))

    args = (x_t, fused["w1"], fused["b1"], fused["w2"], fused["b2"],
            fused["wh1"], fused["bh1"], fused["wh2"], fused["bh2"])

    grid = (b_pad // tb,)
    x_spec = pl.BlockSpec((obs_dim, tb), lambda i: (0, i))
    # Weights/biases: whole-array blocks with a constant index_map -> stay resident in
    # VMEM across grid steps (no re-DMA).  (pipeline_mode=pl.Buffered(1) would shave the
    # ~90 KB second buffer; skipped to stay conservative.)
    const_spec = lambda a: pl.BlockSpec(a.shape, lambda i: (0, 0))
    in_specs = [x_spec] + [const_spec(a) for a in args[1:]]
    out_spec = pl.BlockSpec((out_rows, tb), lambda i: (0, i))       # lane-dense (8, TB) slab

    weight_bytes = sum(int(a.size) * a.dtype.itemsize for a in args[1:])
    cost = pl.CostEstimate(
        flops=2 * b_pad * (obs_dim * h1 + h1 * h2 + h2 * hh + hh * out_rows),
        transcendentals=0,
        bytes_accessed=b_pad * (obs_dim * x_t.dtype.itemsize + out_rows * 4) + weight_bytes,
    )

    out = pl.pallas_call(
        _make_kernel(compute_dtype),
        out_shape=jax.ShapeDtypeStruct((out_rows, b_pad), jnp.float32),
        grid=grid,
        in_specs=in_specs,
        out_specs=out_spec,
        compiler_params=pltpu.CompilerParams(dimension_semantics=("parallel",)),
        cost_estimate=cost,
    )(*args)

    policy = out[:n_actions, :B].T                                  # (B, n_actions)
    value = out[n_actions:n_actions + 1, :B].T                      # (B, 1)
    return policy, value


def init_params(key, obs_dim, n_actions):
    """Deterministic init matching torch.nn.Linear's U(-1/sqrt(fan_in), 1/sqrt(fan_in)).
    Weights stored batch-major as (in_features, out_features); fuse_params transposes."""
    def linear(key, fan_in, fan_out):
        kw, kb = jax.random.split(key)
        bound = 1.0 / math.sqrt(fan_in)
        w = jax.random.uniform(kw, (fan_in, fan_out), jnp.float32, -bound, bound)
        b = jax.random.uniform(kb, (1, fan_out), jnp.float32, -bound, bound)
        return w, b

    keys = jax.random.split(key, 6)
    w1, b1 = linear(keys[0], obs_dim, 128)
    w2, b2 = linear(keys[1], 128, 64)
    wp1, bp1 = linear(keys[2], 64, 32)
    wp2, bp2 = linear(keys[3], 32, n_actions)
    wv1, bv1 = linear(keys[4], 64, 32)
    wv2, bv2 = linear(keys[5], 32, 1)
    return dict(
        w1=w1, b1=b1, w2=w2, b2=b2,
        wp1=wp1, bp1=bp1, wp2=wp2, bp2=bp2,
        wv1=wv1, bv1=bv1, wv2=wv2, bv2=bv2,
    )


def reference_forward(x, p):
    relu = lambda a: jnp.maximum(a, 0.0)
    h = relu(x @ p["w1"] + p["b1"])
    h = relu(h @ p["w2"] + p["b2"])
    pol = relu(h @ p["wp1"] + p["bp1"]) @ p["wp2"] + p["bp2"]
    val = relu(h @ p["wv1"] + p["bv1"]) @ p["wv2"] + p["bv2"]
    return pol, val


if __name__ == "__main__":
    key = jax.random.PRNGKey(0)
    k_param, k_x1, k_x2 = jax.random.split(key, 3)

    obs_dim = 8      # LunarLander observation size (input_shape = (8,))
    n_actions = 4    # LunarLander discrete actions

    params = init_params(k_param, obs_dim, n_actions)
    fused_f32 = fuse_params(params, n_actions)

    # Case 1: tiny single-tile batch, f32 path (strict check).
    x1 = jax.random.normal(k_x1, (8, obs_dim), jnp.float32)
    pol1, val1 = lunar_a2c_forward(x1, fused_f32, n_actions=n_actions)
    jax.block_until_ready((pol1, val1))
    pr1, vr1 = reference_forward(x1, params)
    assert pol1.shape == (8, n_actions) and val1.shape == (8, 1)
    assert jnp.allclose(pol1, pr1, atol=1e-5, rtol=1e-5)
    assert jnp.allclose(val1, vr1, atol=1e-5, rtol=1e-5)

    # Case 2: multi-tile pipelined grid with a ragged batch (300 rows -> 3 tiles of 128).
    x2 = jax.random.normal(k_x2, (300, obs_dim), jnp.float32)
    pol2, val2 = lunar_a2c_forward(x2, fused_f32, n_actions=n_actions, tile_b=128)
    jax.block_until_ready((pol2, val2))
    pr2, vr2 = reference_forward(x2, params)
    assert pol2.shape == (300, n_actions) and val2.shape == (300, 1)
    assert jnp.allclose(pol2, pr2, atol=1e-5, rtol=1e-5)
    assert jnp.allclose(val2, vr2, atol=1e-5, rtol=1e-5)

    # Case 3: bf16 MXU-operand fast path (weights pre-cast once; f32 accumulate/elementwise).
    fused_bf16 = fuse_params(params, n_actions, compute_dtype=jnp.bfloat16)
    pol3, val3 = lunar_a2c_forward(x2, fused_bf16, n_actions=n_actions, tile_b=128)
    jax.block_until_ready((pol3, val3))
    assert jnp.allclose(pol3, pr2, atol=5e-2, rtol=5e-2)
    assert jnp.allclose(val3, vr2, atol=5e-2, rtol=5e-2)

    print("KERNEL_OK")
</pallas_src>

<mosaic_0001>
module attributes {stable_mosaic.version = 11 : i64} {
  func.func @kernel(%arg0: i32, %arg1: memref<8x128xf32, #tpu.memory_space<vmem>>, %arg2: memref<128x8xf32, #tpu.memory_space<vmem>>, %arg3: memref<128x1xf32, #tpu.memory_space<vmem>>, %arg4: memref<64x128xf32, #tpu.memory_space<vmem>>, %arg5: memref<64x1xf32, #tpu.memory_space<vmem>>, %arg6: memref<64x64xf32, #tpu.memory_space<vmem>>, %arg7: memref<64x1xf32, #tpu.memory_space<vmem>>, %arg8: memref<8x64xf32, #tpu.memory_space<vmem>>, %arg9: memref<8x1xf32, #tpu.memory_space<vmem>>, %arg10: memref<8x128xf32, #tpu.memory_space<vmem>>) attributes {dimension_semantics = [#tpu.dimension_semantics<parallel>], iteration_bounds = array<i64: 1>, scalar_prefetch = 0 : i64, scratch_operands = 0 : i64, tpu.core_type = #tpu.core_type<tc>, window_params = [{transform_indices = @transform_0, window_bounds = array<i64: 8, 128>}, {pipeline_mode = #tpu.pipeline_mode<synchronous>, transform_indices = @transform_1, window_bounds = array<i64: 128, 8>}, {pipeline_mode = #tpu.pipeline_mode<synchronous>, transform_indices = @transform_2, window_bounds = array<i64: 128, 1>}, {pipeline_mode = #tpu.pipeline_mode<synchronous>, transform_indices = @transform_3, window_bounds = array<i64: 64, 128>}, {pipeline_mode = #tpu.pipeline_mode<synchronous>, transform_indices = @transform_4, window_bounds = array<i64: 64, 1>}, {pipeline_mode = #tpu.pipeline_mode<synchronous>, transform_indices = @transform_5, window_bounds = array<i64: 64, 64>}, {pipeline_mode = #tpu.pipeline_mode<synchronous>, transform_indices = @transform_6, window_bounds = array<i64: 64, 1>}, {pipeline_mode = #tpu.pipeline_mode<synchronous>, transform_indices = @transform_7, window_bounds = array<i64: 8, 64>}, {pipeline_mode = #tpu.pipeline_mode<synchronous>, transform_indices = @transform_8, window_bounds = array<i64: 8, 1>}, {transform_indices = @transform_9, window_bounds = array<i64: 8, 128>}]} {
    %c0 = arith.constant 0 : index
    %c0_0 = arith.constant 0 : index
    %0 = vector.load %arg1[%c0, %c0_0] : memref<8x128xf32, #tpu.memory_space<vmem>>, vector<8x128xf32>
    %c0_1 = arith.constant 0 : index
    %c0_2 = arith.constant 0 : index
    %1 = vector.load %arg2[%c0_1, %c0_2] : memref<128x8xf32, #tpu.memory_space<vmem>>, vector<128x8xf32>
    %cst = arith.constant dense<0.000000e+00> : vector<128x128xf32>
    %2 = tpu.matmul %1, %0, %cst {dimension_numbers = #tpu.dot_dimension_numbers<[1], [0], [0], [1], [0, 0, 1, 1], [], []>} : vector<128x8xf32>, vector<8x128xf32>, vector<128x128xf32> -> vector<128x128xf32>
    %c0_3 = arith.constant 0 : index
    %c0_4 = arith.constant 0 : index
    %3 = vector.load %arg3[%c0_3, %c0_4] : memref<128x1xf32, #tpu.memory_space<vmem>>, vector<128x1xf32>
    %4 = vector.broadcast %3 : vector<128x1xf32> to vector<128x128xf32>
    %5 = arith.addf %2, %4 : vector<128x128xf32>
    %cst_5 = arith.constant 0.000000e+00 : f32
    %6 = vector.broadcast %cst_5 : f32 to vector<128x128xf32>
    %7 = arith.maximumf %5, %6 : vector<128x128xf32>
    %c0_6 = arith.constant 0 : index
    %c0_7 = arith.constant 0 : index
    %8 = vector.load %arg4[%c0_6, %c0_7] : memref<64x128xf32, #tpu.memory_space<vmem>>, vector<64x128xf32>
    %cst_8 = arith.constant dense<0.000000e+00> : vector<64x128xf32>
    %9 = tpu.matmul %8, %7, %cst_8 {dimension_numbers = #tpu.dot_dimension_numbers<[1], [0], [0], [1], [0, 0, 1, 1], [], []>} : vector<64x128xf32>, vector<128x128xf32>, vector<64x128xf32> -> vector<64x128xf32>
    %c0_9 = arith.constant 0 : index
    %c0_10 = arith.constant 0 : index
    %10 = vector.load %arg5[%c0_9, %c0_10] : memref<64x1xf32, #tpu.memory_space<vmem>>, vector<64x1xf32>
    %11 = vector.broadcast %10 : vector<64x1xf32> to vector<64x128xf32>
    %12 = arith.addf %9, %11 : vector<64x128xf32>
    %cst_11 = arith.constant 0.000000e+00 : f32
    %13 = vector.broadcast %cst_11 : f32 to vector<64x128xf32>
    %14 = arith.maximumf %12, %13 : vector<64x128xf32>
    %c0_12 = arith.constant 0 : index
    %c0_13 = arith.constant 0 : index
    %15 = vector.load %arg6[%c0_12, %c0_13] : memref<64x64xf32, #tpu.memory_space<vmem>>, vector<64x64xf32>
    %cst_14 = arith.constant dense<0.000000e+00> : vector<64x128xf32>
    %16 = tpu.matmul %15, %14, %cst_14 {dimension_numbers = #tpu.dot_dimension_numbers<[1], [0], [0], [1], [0, 0, 1, 1], [], []>} : vector<64x64xf32>, vector<64x128xf32>, vector<64x128xf32> -> vector<64x128xf32>
    %c0_15 = arith.constant 0 : index
    %c0_16 = arith.constant 0 : index
    %17 = vector.load %arg7[%c0_15, %c0_16] : memref<64x1xf32, #tpu.memory_space<vmem>>, vector<64x1xf32>
    %18 = vector.broadcast %17 : vector<64x1xf32> to vector<64x128xf32>
    %19 = arith.addf %16, %18 : vector<64x128xf32>
    %cst_17 = arith.constant 0.000000e+00 : f32
    %20 = vector.broadcast %cst_17 : f32 to vector<64x128xf32>
    %21 = arith.maximumf %19, %20 : vector<64x128xf32>
    %c0_18 = arith.constant 0 : index
    %c0_19 = arith.constant 0 : index
    %22 = vector.load %arg8[%c0_18, %c0_19] : memref<8x64xf32, #tpu.memory_space<vmem>>, vector<8x64xf32>
    %cst_20 = arith.constant dense<0.000000e+00> : vector<8x128xf32>
    %23 = tpu.matmul %22, %21, %cst_20 {dimension_numbers = #tpu.dot_dimension_numbers<[1], [0], [0], [1], [0, 0, 1, 1], [], []>} : vector<8x64xf32>, vector<64x128xf32>, vector<8x128xf32> -> vector<8x128xf32>
    %c0_21 = arith.constant 0 : index
    %c0_22 = arith.constant 0 : index
    %24 = vector.load %arg9[%c0_21, %c0_22] : memref<8x1xf32, #tpu.memory_space<vmem>>, vector<8x1xf32>
    %25 = vector.broadcast %24 : vector<8x1xf32> to vector<8x128xf32>
    %26 = arith.addf %23, %25 : vector<8x128xf32>
    %c0_23 = arith.constant 0 : index
    %c0_24 = arith.constant 0 : index
    %27 = vector.load %arg10[%c0_23, %c0_24] : memref<8x128xf32, #tpu.memory_space<vmem>>, vector<8x128xf32>
    tpu.vector_store %arg10[%c0_23, %c0_24], %26 {strides = array<i32>} : memref<8x128xf32, #tpu.memory_space<vmem>>, vector<8x128xf32>,
    return
  }
  func.func @transform_0(%arg0: i32) -> (i32, i32) {
    %c0_i32 = arith.constant 0 : i32
    %c0_i32_0 = arith.constant 0 : i32
    return %c0_i32, %arg0 : i32, i32
  }
  func.func @transform_1(%arg0: i32) -> (i32, i32) {
    %c0_i32 = arith.constant 0 : i32
    %c0_i32_0 = arith.constant 0 : i32
    %c0_i32_1 = arith.constant 0 : i32
    return %c0_i32, %c0_i32_0 : i32, i32
  }
  func.func @transform_2(%arg0: i32) -> (i32, i32) {
    %c0_i32 = arith.constant 0 : i32
    %c0_i32_0 = arith.constant 0 : i32
    %c0_i32_1 = arith.constant 0 : i32
    return %c0_i32, %c0_i32_0 : i32, i32
  }
  func.func @transform_3(%arg0: i32) -> (i32, i32) {
    %c0_i32 = arith.constant 0 : i32
    %c0_i32_0 = arith.constant 0 : i32
    %c0_i32_1 = arith.constant 0 : i32
    return %c0_i32, %c0_i32_0 : i32, i32
  }
  func.func @transform_4(%arg0: i32) -> (i32, i32) {
    %c0_i32 = arith.constant 0 : i32
    %c0_i32_0 = arith.constant 0 : i32
    %c0_i32_1 = arith.constant 0 : i32
    return %c0_i32, %c0_i32_0 : i32, i32
  }
  func.func @transform_5(%arg0: i32) -> (i32, i32) {
    %c0_i32 = arith.constant 0 : i32
    %c0_i32_0 = arith.constant 0 : i32
    %c0_i32_1 = arith.constant 0 : i32
    return %c0_i32, %c0_i32_0 : i32, i32
  }
  func.func @transform_6(%arg0: i32) -> (i32, i32) {
    %c0_i32 = arith.constant 0 : i32
    %c0_i32_0 = arith.constant 0 : i32
    %c0_i32_1 = arith.constant 0 : i32
    return %c0_i32, %c0_i32_0 : i32, i32
  }
  func.func @transform_7(%arg0: i32) -> (i32, i32) {
    %c0_i32 = arith.constant 0 : i32
    %c0_i32_0 = arith.constant 0 : i32
    %c0_i32_1 = arith.constant 0 : i32
    return %c0_i32, %c0_i32_0 : i32, i32
  }
  func.func @transform_8(%arg0: i32) -> (i32, i32) {
    %c0_i32 = arith.constant 0 : i32
    %c0_i32_0 = arith.constant 0 : i32
    %c0_i32_1 = arith.constant 0 : i32
    return %c0_i32, %c0_i32_0 : i32, i32
  }
  func.func @transform_9(%arg0: i32) -> (i32, i32) {
    %c0_i32 = arith.constant 0 : i32
    %c0_i32_0 = arith.constant 0 : i32
    return %c0_i32, %arg0 : i32, i32
  }
}

</mosaic_0001>

<bundles_post_ra>
// kernel: lunar_a2c_forward.1
= control target key start
LH: loop header
LB: loop body
LE: loop exit
PB: predicated region body
PF: predicated region fallthrough
CT: control target
= control target key end

     0   :  { %vm145_vm0 = vcmask 64512   ;;  %v1077_v3 = vmov 0   ;;  %vm580_vm1 = vcmask 523264   ;;  %vm1079_vm2 = vmmov 0   ;;  %s1360_s0 = inlined_call_operand.vmem [shape: f32[8,128], index: 0, kind: input, shape index: {}]   ;;  %s1361_s1 = inlined_call_operand.vmem [shape: f32[128,8], index: 1, kind: input, shape index: {}]   ;;  %s1362_s2 = inlined_call_operand.vmem [shape: f32[128,1], index: 2, kind: input, shape index: {}]   ;;  %s1363_s4 = inlined_call_operand.vmem [shape: f32[64,1], index: 4, kind: input, shape index: {}]   ;;  %s1364_s6 = inlined_call_operand.vmem [shape: f32[64,1], index: 6, kind: input, shape index: {}]   ;;  %s1365_s8 = inlined_call_operand.vmem [shape: f32[8,1], index: 8, kind: input, shape index: {}]   ;;  %s1366_s3 = inlined_call_operand.vmem [shape: f32[64,128], index: 3, kind: input, shape index: {}]   ;;  %s1367_s5 = inlined_call_operand.vmem [shape: f32[64,64], index: 5, kind: input, shape index: {}]   ;;  %s1368_s7 = inlined_call_operand.vmem [shape: f32[8,64], index: 7, kind: input, shape index: {}]   ;;  %s1369_s9 = inlined_call_operand.vmem [shape: f32[8,128], index: 9, kind: output, shape index: {}]  }
   0x1   :  { %v32_v0 = vld [vmem:[%s1360_s0] sm:$0xff]  ;;  %v34_v2 = vld [vmem:[%s1361_s1 + $0x8] sm:$0xff]  ;;  %1075 = vset.pattern.permute.xlu0 %v1077_v3  ;;  %1076 = vset.pattern.permute.xlu1 %v1077_v3  ;;  %v35_v4 = vld [vmem:[%s1361_s1 + $0x10] sm:$0xff] }
   0x2   :  { %v33_v1 = vld [vmem:[%s1361_s1] sm:$0xff]  ;;  %894 = vmatprep.subr.mxu0 %v32_v0  ;;  %v36_v6 = vld [vmem:[%s1361_s1 + $0x18] sm:$0xff]  ;;  %v50_v8 = vld [vmem:[%s1362_s2 + $0x8] sm:$0xff] }
   0x3   :  { %896 = vmatprep.mubr.msk.f32.mxu0 %vm145_vm0, %v33_v1  ;;  %895 = vmatpush3.msra.mxu0 %v32_v0  ;;  %v49_v5 = vld [vmem:[%s1362_s2] sm:$0xff]  ;;  %v51_v9 = vld [vmem:[%s1362_s2 + $0x10] sm:$0xff]  ;;  %v52_v10 = vld [vmem:[%s1362_s2 + $0x18] sm:$0xff] }
   0x4   :  { %897 = vmatmul.mubr.msk.f32.vlgmr.msra.gmra.mrb[0].mxu0 %vm145_vm0, %v34_v2  ;;  %67 = vperm.xlu0 %1075, %v49_v5   ;;  %v37_v7 = vld [vmem:[%s1361_s1 + $0x20] sm:$0xff]  ;;  %v38_v11 = vld [vmem:[%s1361_s1 + $0x28] sm:$0xff]  ;;  %v39_v12 = vld [vmem:[%s1361_s1 + $0x30] sm:$0xff] }
   0x5   :  { %899 = vmatprep.mubr.msk.f32.mxu0 %vm145_vm0, %v35_v4  ;;  %77 = vperm.xlu1 %1076, %v51_v9   ;;  %v53_v13 = vld [vmem:[%s1362_s2 + $0x20] sm:$0xff]  ;;  %v54_v14 = vld [vmem:[%s1362_s2 + $0x28] sm:$0xff]  ;;  %v40_v15 = vld [vmem:[%s1361_s1 + $0x38] sm:$0xff] }
   0x6   :  { %v41_v16 = vld [vmem:[%s1361_s1 + $0x40] sm:$0xff]  ;;  %v55_v17 = vld [vmem:[%s1362_s2 + $0x30] sm:$0xff]  ;;  %v56_v18 = vld [vmem:[%s1362_s2 + $0x38] sm:$0xff] }
   0x7   :  { %v42_v19 = vld [vmem:[%s1361_s1 + $0x48] sm:$0xff]  ;;  %v43_v20 = vld [vmem:[%s1361_s1 + $0x50] sm:$0xff]  ;;  %v57_v21 = vld [vmem:[%s1362_s2 + $0x40] sm:$0xff] }
   0x8   :  { %900 = vmatmul.mubr.msk.f32.gmra.mrb[2].mxu0 %vm145_vm0, %v36_v6  ;;  %72 = vperm.xlu0 %1075, %v50_v8   ;;  %v58_v22 = vld [vmem:[%s1362_s2 + $0x48] sm:$0xff]  ;;  %v44_v23 = vld [vmem:[%s1361_s1 + $0x58] sm:$0xff]  ;;  %v45_v24 = vld [vmem:[%s1361_s1 + $0x60] sm:$0xff] }
   0x9   :  { %902 = vmatprep.mubr.msk.f32.mxu0 %vm145_vm0, %v37_v7  ;;  %82 = vperm.xlu1 %1076, %v52_v10   ;;  %v59_v25 = vld [vmem:[%s1362_s2 + $0x50] sm:$0xff]  ;;  %v60_v26 = vld [vmem:[%s1362_s2 + $0x58] sm:$0xff]  ;;  %v46_v27 = vld [vmem:[%s1361_s1 + $0x68] sm:$0xff] }
   0xa   :  { %v47_v28 = vld [vmem:[%s1361_s1 + $0x70] sm:$0xff]  ;;  %v61_v29 = vld [vmem:[%s1362_s2 + $0x60] sm:$0xff]  ;;  %v62_v30 = vld [vmem:[%s1362_s2 + $0x68] sm:$0xff] }
   0xb   :  { %v48_v31 = vld [vmem:[%s1361_s1 + $0x78] sm:$0xff]  ;;  %v63_v32 = vld [vmem:[%s1362_s2 + $0x70] sm:$0xff]  ;;  %v363_v34 = vld [vmem:[%s1363_s4] sm:$0xff] }
   0xc   :  { %903 = vmatmul.mubr.msk.f32.gmra.mrb[4].mxu0 %vm145_vm0, %v38_v11  ;;  %87 = vperm.xlu0 %1075, %v53_v13   ;;  %v64_v33 = vld [vmem:[%s1362_s2 + $0x78] sm:$0xff]  ;;  %v364_v35 = vld [vmem:[%s1363_s4 + $0x8] sm:$0xff]  ;;  %v365_v36 = vld [vmem:[%s1363_s4 + $0x10] sm:$0xff] }
   0xd   :  { %905 = vmatprep.mubr.msk.f32.mxu0 %vm145_vm0, %v39_v12  ;;  %92 = vperm.xlu1 %1076, %v54_v14   ;;  %v366_v37 = vld [vmem:[%s1363_s4 + $0x18] sm:$0xff]  ;;  %v367_v38 = vld [vmem:[%s1363_s4 + $0x20] sm:$0xff]  ;;  %v368_v39 = vld [vmem:[%s1363_s4 + $0x28] sm:$0xff] }
   0xe   :  { %v369_v40 = vld [vmem:[%s1363_s4 + $0x30] sm:$0xff]  ;;  %v370_v41 = vld [vmem:[%s1363_s4 + $0x38] sm:$0xff]  ;;  %v532_v42 = vld [vmem:[%s1364_s6] sm:$0xff] }
   0xf   :  { %v533_v43 = vld [vmem:[%s1364_s6 + $0x8] sm:$0xff]  ;;  %v534_v44 = vld [vmem:[%s1364_s6 + $0x10] sm:$0xff]  ;;  %v535_v45 = vld [vmem:[%s1364_s6 + $0x18] sm:$0xff] }
  0x10   :  { %906 = vmatmul.mubr.msk.f32.gmra.mrb[6].mxu0 %vm145_vm0, %v40_v15  ;;  %97 = vperm.xlu0 %1075, %v55_v17   ;;  %v536_v46 = vld [vmem:[%s1364_s6 + $0x20] sm:$0xff]  ;;  %v537_v47 = vld [vmem:[%s1364_s6 + $0x28] sm:$0xff]  ;;  %v538_v48 = vld [vmem:[%s1364_s6 + $0x30] sm:$0xff] }
  0x11   :  { %908 = vmatprep.mubr.msk.f32.mxu0 %vm145_vm0, %v41_v16  ;;  %102 = vperm.xlu1 %1076, %v56_v18   ;;  %v539_v49 = vld [vmem:[%s1364_s6 + $0x38] sm:$0xff]  ;;  %v719_v50 = vld [vmem:[%s1365_s8] sm:$0xff] }
  0x12   :  { %v355_v51 = vld [vmem:[%s1366_s3] sm:$0xff] }
  0x13   :  { %952 = vmatprep.mubr.f32.mxu1 %v355_v51 }
  0x14   :  { %909 = vmatmul.mubr.msk.f32.gmra.mrb[8].mxu0 %vm145_vm0, %v42_v19  ;;  %107 = vperm.xlu0 %1075, %v57_v21  }
  0x15   :  { %911 = vmatprep.mubr.msk.f32.mxu0 %vm145_vm0, %v43_v20  ;;  %112 = vperm.xlu1 %1076, %v58_v22  }
  0x18   :  { %912 = vmatmul.mubr.msk.f32.gmra.mrb[10].mxu0 %vm145_vm0, %v44_v23  ;;  %117 = vperm.xlu0 %1075, %v59_v25  }
  0x19   :  { %914 = vmatprep.mubr.msk.f32.mxu0 %vm145_vm0, %v45_v24  ;;  %122 = vperm.xlu1 %1076, %v60_v26  }
  0x1c   :  { %915 = vmatmul.mubr.msk.f32.gmra.mrb[12].mxu0 %vm145_vm0, %v46_v27  ;;  %127 = vperm.xlu0 %1075, %v61_v29  }
  0x1d   :  { %917 = vmatprep.mubr.msk.f32.mxu0 %vm145_vm0, %v47_v28  ;;  %132 = vperm.xlu1 %1076, %v62_v30  }
  0x20   :  { %918 = vmatmul.mubr.msk.f32.gmra.mrb[14].mxu0 %vm145_vm0, %v48_v31  ;;  %137 = vperm.xlu0 %1075, %v63_v32  }
  0x21   :  { %142 = vperm.xlu1 %1076, %v64_v33  }
  0x24   :  { %373 = vperm.xlu0 %1075, %v363_v34  }
  0x25   :  { %378 = vperm.xlu1 %1076, %v364_v35  }
  0x28   :  { %383 = vperm.xlu0 %1075, %v365_v36  }
  0x29   :  { %388 = vperm.xlu1 %1076, %v366_v37  }
  0x2c   :  { %393 = vperm.xlu0 %1075, %v367_v38  }
  0x2d   :  { %398 = vperm.xlu1 %1076, %v368_v39  }
  0x30   :  { %403 = vperm.xlu0 %1075, %v369_v40  }
  0x31   :  { %408 = vperm.xlu1 %1076, %v370_v41  }
  0x34   :  { %542 = vperm.xlu0 %1075, %v532_v42  }
  0x35   :  { %547 = vperm.xlu1 %1076, %v533_v43  }
  0x38   :  { %552 = vperm.xlu0 %1075, %v534_v44  }
  0x39   :  { %557 = vperm.xlu1 %1076, %v535_v45  }
  0x3c   :  { %562 = vperm.xlu0 %1075, %v536_v46  }
  0x3d   :  { %567 = vperm.xlu1 %1076, %v537_v47  }
  0x40   :  { %572 = vperm.xlu0 %1075, %v538_v48  }
  0x41   :  { %577 = vperm.xlu1 %1076, %v539_v49  }
  0x44   :  { %722 = vperm.xlu0 %1075, %v719_v50  }
  0x83   :  { %v68_v53 = vpop.permute.xlu0 %67 }
  0x84   :  { %v78_v52 = vpop.permute.xlu1 %77 }
  0x87   :  { %v73_v55 = vpop.permute.xlu0 %72 }
  0x88   :  { %v83_v54 = vpop.permute.xlu1 %82 }
  0x8b   :  { %v88_v57 = vpop.permute.xlu0 %87 }
  0x8c   :  { %v93_v56 = vpop.permute.xlu1 %92 }
  0x8f   :  { %v98_v2 = vpop.permute.xlu0 %97 }
  0x90   :  { %v103_v63 = vpop.permute.xlu1 %102 }
  0x93   :  { %v108_v15 = vpop.permute.xlu0 %107 }
  0x94   :  { %v113_v12 = vpop.permute.xlu1 %112 }
  0x97   :  { %v118_v27 = vpop.permute.xlu0 %117 }
  0x98   :  { %v123_v24 = vpop.permute.xlu1 %122 }
  0x9b   :  { %v128_v40 = vpop.permute.xlu0 %127 }
  0x9c   :  { %v133_v37 = vpop.permute.xlu1 %132 }
  0xa0   :  { %v143_v49 = vpop.permute.xlu1 %142 }
  0xd7   :  { %v898_v58 = vpop.f32.mrb[0].mxu0 }
  0xd8   :  { %v266_v59 = vadd.f32 %v898_v58, %v73_v55  ;;  %v260_v60 = vpop.f32.mrb[1].mxu0 }
  0xd9   :  { %v261_v61 = vadd.f32 %v260_v60, %v68_v53  ;;  %v356_v60 = vld [vmem:[%s1366_s3 + $0x8] sm:$0xff] }
  0xda   :  { %v340_v62 = vmax.f32 %v266_v59, 0.0 }
  0xdb   :  { %v339_v0 = vmax.f32 %v261_v61, 0.0  ;;  %v901_v1 = vpop.f32.mrb[2].mxu0  ;;  %v357_v61 = vld [vmem:[%s1366_s3 + $0x10] sm:$0xff] }
  0xdc   :  { %v276_v3 = vadd.f32 %v901_v1, %v83_v54  ;;  %v270_v4 = vpop.f32.mrb[3].mxu0  ;;  %v361_v1 = vld [vmem:[%s1366_s3 + $0x30] sm:$0xff] }
  0xdd   :  { %v271_v5 = vadd.f32 %v270_v4, %v78_v52  ;;  %v1011_v6 = vpack.c.bf16 %v340_v62, %v339_v0  ;;  %v138_v52 = vpop.permute.xlu0 %137  ;;  %v358_v62 = vld [vmem:[%s1366_s3 + $0x18] sm:$0xff]  ;;  %v360_v0 = vld [vmem:[%s1366_s3 + $0x28] sm:$0xff]  ;;  %v379_v4 = vpop.permute.xlu1 %378 }
  0xde   :  { %v342_v7 = vmax.f32 %v276_v3, 0.0  ;;  %v524_v3 = vld [vmem:[%s1367_s5] sm:$0xff] }
  0xdf   :  { %v341_v8 = vmax.f32 %v271_v5, 0.0  ;;  %v904_v9 = vpop.f32.mrb[4].mxu0  ;;  %1012 = vmatprep.subr.bf16.mxu1 %v1011_v6  ;;  %980 = vmatprep.mubr.msk.f32.mxu0 %vm580_vm1, %v524_v3 }
  0xe0   :  { %v286_v10 = vadd.f32 %v904_v9, %v93_v56  ;;  %v280_v11 = vpop.f32.mrb[5].mxu0  ;;  %1014 = vmatpush3.bf16.msra.mxu1 %v1011_v6 }
  0xe1   :  { %v1015_v13 = vpack.c.bf16 %v342_v7, %v341_v8  ;;  %v281_v14 = vadd.f32 %v280_v11, %v88_v57  ;;  %v374_v5 = vpop.permute.xlu0 %373  ;;  %v389_v6 = vpop.permute.xlu1 %388 }
  0xe2   :  { %v344_v16 = vmax.f32 %v286_v10, 0.0 }
  0xe3   :  { %v343_v17 = vmax.f32 %v281_v14, 0.0  ;;  %v907_v18 = vpop.f32.mrb[6].mxu0  ;;  %1016 = vmatprep.subr.bf16.mxu1 %v1015_v13 }
  0xe4   :  { %v296_v19 = vadd.f32 %v907_v18, %v103_v63  ;;  %v290_v20 = vpop.f32.mrb[7].mxu0  ;;  %1018 = vmatpush3.bf16.msra.mxu1 %v1015_v13  ;;  %v359_v63 = vld [vmem:[%s1366_s3 + $0x20] sm:$0xff] }
  0xe5   :  { %v1019_v21 = vpack.c.bf16 %v344_v16, %v343_v17  ;;  %v291_v22 = vadd.f32 %v290_v20, %v98_v2  ;;  %v362_v2 = vld [vmem:[%s1366_s3 + $0x38] sm:$0xff]  ;;  %v384_v8 = vpop.permute.xlu0 %383  ;;  %v399_v17 = vpop.permute.xlu1 %398 }
  0xe6   :  { %v346_v23 = vmax.f32 %v296_v19, 0.0 }
  0xe7   :  { %v345_v25 = vmax.f32 %v291_v22, 0.0  ;;  %v910_v26 = vpop.f32.mrb[8].mxu0  ;;  %1020 = vmatprep.subr.bf16.mxu1 %v1019_v21 }
  0xe8   :  { %v306_v28 = vadd.f32 %v910_v26, %v113_v12  ;;  %v300_v29 = vpop.f32.mrb[9].mxu0  ;;  %1022 = vmatpush3.bf16.msra.mxu1 %v1019_v21 }
  0xe9   :  { %v1023_v30 = vpack.c.bf16 %v346_v23, %v345_v25  ;;  %v301_v31 = vadd.f32 %v300_v29, %v108_v15  ;;  %v394_v20 = vpop.permute.xlu0 %393  ;;  %v409_v29 = vpop.permute.xlu1 %408 }
  0xea   :  { %v348_v32 = vmax.f32 %v306_v28, 0.0 }
  0xeb   :  { %v347_v33 = vmax.f32 %v301_v31, 0.0  ;;  %v913_v34 = vpop.f32.mrb[10].mxu0  ;;  %1024 = vmatprep.subr.bf16.mxu1 %v1023_v30 }
  0xec   :  { %v316_v35 = vadd.f32 %v913_v34, %v123_v24  ;;  %v310_v36 = vpop.f32.mrb[11].mxu0  ;;  %1026 = vmatpush3.bf16.msra.mxu1 %v1023_v30 }
  0xed   :  { %v1027_v38 = vpack.c.bf16 %v348_v32, %v347_v33  ;;  %v311_v39 = vadd.f32 %v310_v36, %v118_v27  ;;  %v404_v32 = vpop.permute.xlu0 %403 }
  0xee   :  { %v350_v41 = vmax.f32 %v316_v35, 0.0 }
  0xef   :  { %v349_v42 = vmax.f32 %v311_v39, 0.0  ;;  %v916_v43 = vpop.f32.mrb[12].mxu0  ;;  %1028 = vmatprep.subr.bf16.mxu1 %v1027_v38 }
  0xf0   :  { %v326_v44 = vadd.f32 %v916_v43, %v133_v37  ;;  %v320_v45 = vpop.f32.mrb[13].mxu0  ;;  %1030 = vmatpush3.bf16.msra.mxu1 %v1027_v38  ;;  %v528_v43 = vld [vmem:[%s1367_s5 + $0x20] sm:$0xff] }
  0xf1   :  { %v1031_v46 = vpack.c.bf16 %v350_v41, %v349_v42  ;;  %v321_v47 = vadd.f32 %v320_v45, %v128_v40  ;;  %v525_v40 = vld [vmem:[%s1367_s5 + $0x8] sm:$0xff]  ;;  %v526_v41 = vld [vmem:[%s1367_s5 + $0x10] sm:$0xff]  ;;  %v527_v42 = vld [vmem:[%s1367_s5 + $0x18] sm:$0xff] }
  0xf2   :  { %v352_v48 = vmax.f32 %v326_v44, 0.0  ;;  %v529_v44 = vld [vmem:[%s1367_s5 + $0x28] sm:$0xff]  ;;  %v530_v45 = vld [vmem:[%s1367_s5 + $0x30] sm:$0xff] }
  0xf3   :  { %v351_v50 = vmax.f32 %v321_v47, 0.0  ;;  %v919_v51 = vpop.f32.mrb[14].mxu0  ;;  %1032 = vmatprep.subr.bf16.mxu1 %v1031_v46  ;;  %v1078_v47 = vmov 0.0|0.0  }
  0xf4   :  { %v336_v53 = vadd.f32 %v919_v51, %v143_v49  ;;  %v330_v54 = vpop.f32.mrb[15].mxu0  ;;  %1034 = vmatpush3.bf16.msra.mxu1 %v1031_v46  ;;  %v531_v46 = vld [vmem:[%s1367_s5 + $0x38] sm:$0xff]  ;;  %v548_v49 = vpop.permute.xlu1 %547 }
  0xf5   :  { %v1035_v55 = vpack.c.bf16 %v352_v48, %v351_v50  ;;  %v331_v56 = vadd.f32 %v330_v54, %v138_v52  ;;  %v1080_v48 = vmov 0.0   ;;  %v543_v50 = vpop.permute.xlu0 %542 }
  0xf6   :  { %v354_v57 = vmax.f32 %v336_v53, 0.0 }
  0xf7   :  { %v353_v58 = vmax.f32 %v331_v56, 0.0  ;;  %1036 = vmatprep.subr.bf16.mxu1 %v1035_v55 }
  0xf8   :  { %1038 = vmatpush3.bf16.msra.mxu1 %v1035_v55  ;;  %v558_v51 = vpop.permute.xlu1 %557 }
  0xf9   :  { %v1039_v59 = vpack.c.bf16 %v354_v57, %v353_v58  ;;  %v553_v53 = vpop.permute.xlu0 %552 }
  0xfb   :  { %1040 = vmatprep.subr.bf16.mxu1 %v1039_v59 }
  0xfc   :  { %1042 = vmatpush3.bf16.msra.mxu1 %v1039_v59 }
  0xfd   :  { %1059 = vmatprep.subr.bf16.mxu1 %v1078_v47 }
  0xff   :  { %953 = vmatmul.mubr.f32.vlgmr.msra.gmra.mrb[0].mxu1 %v356_v60 }
 0x100   :  { %955 = vmatprep.mubr.f32.mxu1 %v357_v61 }
 0x103   :  { %956 = vmatmul.mubr.f32.gmra.mrb[2].mxu1 %v358_v62  ;;  %v568_v62 = vpop.permute.xlu1 %567 }
 0x104   :  { %958 = vmatprep.mubr.f32.mxu1 %v359_v63 }
 0x107   :  { %959 = vmatmul.mubr.f32.gmra.mrb[4].mxu1 %v360_v0 }
 0x108   :  { %961 = vmatprep.mubr.f32.mxu1 %v361_v1  ;;  %v563_v1 = vpop.permute.xlu0 %562 }
 0x10b   :  { %962 = vmatmul.mubr.f32.gmra.mrb[6].mxu1 %v362_v2 }
 0x10c   :  { %1008 = vmatprep.mubr.msk.f32.mxu1 %vm1079_vm2, %v1080_v48 }
 0x1d2   :  { %v954_v7 = vpop.f32.mrb[0].mxu1 }
 0x1d3   :  { %v483_v9 = vadd.f32 %v954_v7, %v379_v4  ;;  %v477_v10 = vpop.f32.mrb[1].mxu1 }
 0x1d4   :  { %v478_v11 = vadd.f32 %v477_v10, %v374_v5  ;;  %v578_v10 = vpop.permute.xlu1 %577 }
 0x1d5   :  { %v517_v12 = vmax.f32 %v483_v9, 0.0 }
 0x1d6   :  { %v516_v13 = vmax.f32 %v478_v11, 0.0  ;;  %v957_v14 = vpop.f32.mrb[2].mxu1 }
 0x1d7   :  { %v493_v15 = vadd.f32 %v957_v14, %v389_v6  ;;  %v487_v16 = vpop.f32.mrb[3].mxu1 }
 0x1d8   :  { %v1043_v18 = vpack.c.bf16 %v517_v12, %v516_v13  ;;  %v488_v19 = vadd.f32 %v487_v16, %v384_v8  ;;  %v573_v13 = vpop.permute.xlu0 %572 }
 0x1d9   :  { %v519_v21 = vmax.f32 %v493_v15, 0.0 }
 0x1da   :  { %v518_v22 = vmax.f32 %v488_v19, 0.0  ;;  %v960_v23 = vpop.f32.mrb[4].mxu1  ;;  %1044 = vmatprep.subr.bf16.mxu0 %v1043_v18 }
 0x1db   :  { %v503_v24 = vadd.f32 %v960_v23, %v399_v17  ;;  %v497_v25 = vpop.f32.mrb[5].mxu1  ;;  %1046 = vmatpush3.bf16.msra.mxu0 %v1043_v18 }
 0x1dc   :  { %v1047_v26 = vpack.c.bf16 %v519_v21, %v518_v22  ;;  %v498_v27 = vadd.f32 %v497_v25, %v394_v20  ;;  %v718_v21 = vld [vmem:[%s1368_s7] sm:$0xff]  ;;  %v723_v22 = vpop.permute.xlu0 %722 }
 0x1dd   :  { %v521_v28 = vmax.f32 %v503_v24, 0.0 }
 0x1de   :  { %v520_v30 = vmax.f32 %v498_v27, 0.0  ;;  %v963_v31 = vpop.f32.mrb[6].mxu1  ;;  %1048 = vmatprep.subr.bf16.mxu0 %v1047_v26 }
 0x1df   :  { %v513_v33 = vadd.f32 %v963_v31, %v409_v29  ;;  %v507_v34 = vpop.f32.mrb[7].mxu1  ;;  %1050 = vmatpush3.bf16.msra.mxu0 %v1047_v26 }
 0x1e0   :  { %v1051_v35 = vpack.c.bf16 %v521_v28, %v520_v30  ;;  %v508_v36 = vadd.f32 %v507_v34, %v404_v32 }
 0x1e1   :  { %v523_v37 = vmax.f32 %v513_v33, 0.0 }
 0x1e2   :  { %v522_v38 = vmax.f32 %v508_v36, 0.0  ;;  %1052 = vmatprep.subr.bf16.mxu0 %v1051_v35 }
 0x1e3   :  { %1054 = vmatpush3.bf16.msra.mxu0 %v1051_v35 }
 0x1e4   :  { %v1055_v39 = vpack.c.bf16 %v523_v37, %v522_v38 }
 0x1e6   :  { %1056 = vmatprep.subr.bf16.mxu0 %v1055_v39 }
 0x1e7   :  { %1058 = vmatpush3.bf16.msra.mxu0 %v1055_v39 }
 0x1ea   :  { %981 = vmatmul.mubr.msk.f32.vlgmr.msra.gmra.mrb[16].mxu0 %vm580_vm1, %v525_v40 }
 0x1eb   :  { %983 = vmatprep.mubr.msk.f32.mxu0 %vm580_vm1, %v526_v41 }
 0x1ee   :  { %984 = vmatmul.mubr.msk.f32.gmra.mrb[18].mxu0 %vm580_vm1, %v527_v42 }
 0x1ef   :  { %986 = vmatprep.mubr.msk.f32.mxu0 %vm580_vm1, %v528_v43 }
 0x1f2   :  { %987 = vmatmul.mubr.msk.f32.gmra.mrb[20].mxu0 %vm580_vm1, %v529_v44 }
 0x1f3   :  { %989 = vmatprep.mubr.msk.f32.mxu0 %vm580_vm1, %v530_v45 }
 0x1f6   :  { %990 = vmatmul.mubr.msk.f32.gmra.mrb[22].mxu0 %vm580_vm1, %v531_v46 }
 0x2bd   :  { %v982_v52 = vpop.f32.mrb[16].mxu0 }
 0x2be   :  { %v677_v54 = vadd.f32 %v982_v52, %v548_v49  ;;  %v671_v55 = vpop.f32.mrb[17].mxu0 }
 0x2bf   :  { %v672_v56 = vadd.f32 %v671_v55, %v543_v50 }
 0x2c0   :  { %v711_v57 = vmax.f32 %v677_v54, 0.0 }
 0x2c1   :  { %v710_v58 = vmax.f32 %v672_v56, 0.0  ;;  %v985_v59 = vpop.f32.mrb[18].mxu0 }
 0x2c2   :  { %v687_v60 = vadd.f32 %v985_v59, %v558_v51  ;;  %v681_v61 = vpop.f32.mrb[19].mxu0 }
 0x2c3   :  { %v1060_v63 = vpack.c.bf16 %v711_v57, %v710_v58  ;;  %v682_v0 = vadd.f32 %v681_v61, %v553_v53 }
 0x2c4   :  { %v713_v2 = vmax.f32 %v687_v60, 0.0 }
 0x2c5   :  { %v712_v3 = vmax.f32 %v682_v0, 0.0  ;;  %v988_v4 = vpop.f32.mrb[20].mxu0  ;;  %1061 = vmatpush3.bf16.msra.mxu1 %v1060_v63 }
 0x2c6   :  { %v697_v5 = vadd.f32 %v988_v4, %v568_v62  ;;  %v691_v6 = vpop.f32.mrb[21].mxu0  ;;  %1062 = vmatprep.subr.bf16.mxu1 %v1078_v47 }
 0x2c7   :  { %v1063_v7 = vpack.c.bf16 %v713_v2, %v712_v3  ;;  %v692_v8 = vadd.f32 %v691_v6, %v563_v1 }
 0x2c8   :  { %v715_v9 = vmax.f32 %v697_v5, 0.0 }
 0x2c9   :  { %v714_v11 = vmax.f32 %v692_v8, 0.0  ;;  %v991_v12 = vpop.f32.mrb[22].mxu0  ;;  %1064 = vmatpush3.bf16.msra.mxu1 %v1063_v7 }
 0x2ca   :  { %v707_v14 = vadd.f32 %v991_v12, %v578_v10  ;;  %v701_v15 = vpop.f32.mrb[23].mxu0  ;;  %1065 = vmatprep.subr.bf16.mxu1 %v1078_v47 }
 0x2cb   :  { %v1066_v16 = vpack.c.bf16 %v715_v9, %v714_v11  ;;  %v702_v17 = vadd.f32 %v701_v15, %v573_v13 }
 0x2cc   :  { %v717_v18 = vmax.f32 %v707_v14, 0.0 }
 0x2cd   :  { %v716_v19 = vmax.f32 %v702_v17, 0.0  ;;  %1067 = vmatpush3.bf16.msra.mxu1 %v1066_v16 }
 0x2ce   :  { %1068 = vmatprep.subr.bf16.mxu1 %v1078_v47 }
 0x2cf   :  { %v1069_v20 = vpack.c.bf16 %v717_v18, %v716_v19 }
 0x2d1   :  { %1070 = vmatpush3.bf16.msra.mxu1 %v1069_v20 }
 0x2d4   :  { %1009 = vmatmul.mubr.msk.f32.vlgmr.msra.gmra.mrb[8].mxu1 %vm580_vm1, %v718_v21 }
 0x3a7   :  { %v794_v23 = vpop.f32.mrb[8].mxu1 }
 0x3a8   :  { %v795_v24 = vadd.f32 %v794_v23, %v723_v22  ;;  %v1010_v25 = vpop.f32.mrb[9].mxu1 }
 0x3aa   :  { %798 = vst [vmem:[%s1369_s9] sm:$0xff] %v795_v24 }

</bundles_post_ra>
